<compile_context>
chip_gen: v7x
topology: tpu7x:2x2x1
jax: 0.10.0
libtpu: 0.0.40
codegen_flags: <defaults>
</compile_context>

<pallas_src>
import jax
import jax.numpy as jnp
from jax.experimental import pallas as pl
from jax.experimental.pallas import tpu as pltpu


def _drop_path_kernel(scale_ref, x_ref, o_ref):
    """out = x * scale; scale is (tn, 1) in x.dtype, broadcast over channels."""
    o_ref[...] = x_ref[...] * scale_ref[...]


def _round_down8(v):
    return max(8, (v // 8) * 8)


def _vmem_plan():
    """Per-generation (target_block_bytes, vmem_limit_bytes).

    VMEM budget with full-C row tiles on a 1-D grid: double-buffered feature
    input + double-buffered output (4x block bytes) plus the double-buffered
    (tn, 1) scale block, which pads to 128 lanes in VMEM (tn*128*itemsize per
    buffer) — so ~5-6x block bytes total; we size against 7x for slack.
    """
    try:
        cap = int(pltpu.get_tpu_info().vmem_capacity_bytes)
    except Exception:
        # No hardware info at trace time: conservative defaults that fit even
        # v5e's 16 MiB default scoped VMEM without touching vmem_limit_bytes.
        return 2 * 1024 * 1024, None
    # Leave >= 25% of physical VMEM as headroom:
    #   v7x (64 MiB physical)  -> 48 MiB limit, ~6.8 MiB blocks
    #   v5e/v6e (128 MiB phys) -> 96 MiB limit,  8 MiB blocks
    vmem_limit = min((cap * 3) // 4, 96 * 1024 * 1024)
    target_block_bytes = min(8 * 1024 * 1024, vmem_limit // 7)
    return target_block_bytes, vmem_limit


def _choose_tile_n(n, row_bytes, target_block_bytes, min_row_blocks=4):
    """Row tile for full-C (lane-contiguous) blocks on a 1-D row grid."""
    if n <= 8:
        return n                                    # block dim == array dim
    rows = _round_down8(max(8, target_block_bytes // max(1, row_bytes)))
    # Never collapse to a single block: keep >= min_row_blocks row blocks so
    # the DMA pipeline stays double-buffered and v7x's 2 TensorCores both get
    # work through the "parallel" grid axis.
    if n >= 8 * min_row_blocks:
        rows = min(rows, _round_down8(n // min_row_blocks))
    return min(rows, n)


def drop_path_pc(x, batch_ids, batch_size, drop_prob, key, training=True,
                 tile_n=None):
    """JAX/Pallas equivalent of DropPathPC.forward.

    Args:
      x:          (N, C) per-point features.
      batch_ids:  (N,) int batch id of each point (p_pc.batch_ids_).
      batch_size: int, p_pc.batch_size_.
      drop_prob:  float drop probability.
      key:        jax PRNG key for the per-batch bernoulli draw.
      training:   bool, module training flag.
      tile_n:     optional row-tile override.
    """
    if drop_prob == 0.0 or not training:
        return x

    keep_prob = 1.0 - drop_prob
    n, c = x.shape
    itemsize = x.dtype.itemsize

    # Per-batch keep mask folded with 1/keep_prob, gathered per point and cast
    # to x.dtype in the wrapper (tiny O(N) glue that XLA fuses); the kernel
    # only does the broadcast multiply.
    # TODO(synk): `batch_ids_considering_frames_` variant — the caller simply
    # passes those ids as `batch_ids`; the kernel is identical.
    rand = jax.random.uniform(key, (batch_size,), dtype=jnp.float32)
    mask = jnp.floor(keep_prob + rand) * (1.0 / keep_prob)   # {0, 1/keep_prob}
    scale = mask[batch_ids.astype(jnp.int32)].astype(x.dtype).reshape(n, 1)

    if c < 128:
        # Output last dim < 128 lanes would force masked vst.msk partial stores
        # and tiny DMA bursts; for a pure broadcast multiply XLA's fused
        # elementwise is at least as fast, so bypass Pallas here (perf review).
        return x * scale

    row_bytes = c * itemsize
    target_block_bytes, vmem_limit = _vmem_plan()
    tn = tile_n if tile_n is not None else _choose_tile_n(
        n, row_bytes, target_block_bytes)
    grid = (pl.cdiv(n, tn),)

    cost = pl.CostEstimate(
        flops=n * c,
        transcendentals=0,
        bytes_accessed=2 * n * c * itemsize + n * itemsize,
    )

    compiler_kwargs = dict(dimension_semantics=("parallel",))
    if vmem_limit is not None:
        compiler_kwargs["vmem_limit_bytes"] = vmem_limit

    return pl.pallas_call(
        _drop_path_kernel,
        out_shape=jax.ShapeDtypeStruct((n, c), x.dtype),
        grid_spec=pltpu.PrefetchScalarGridSpec(
            num_scalar_prefetch=0,
            grid=grid,
            in_specs=[
                pl.BlockSpec((tn, 1), lambda i: (i, 0)),   # per-point scale
                pl.BlockSpec((tn, c), lambda i: (i, 0)),   # full-C row tile
            ],
            out_specs=pl.BlockSpec((tn, c), lambda i: (i, 0)),
        ),
        compiler_params=pltpu.CompilerParams(**compiler_kwargs),
        cost_estimate=cost,
    )(scale, x)


if __name__ == "__main__":
    key = jax.random.PRNGKey(0)
    k_x, k_drop = jax.random.split(key, 2)

    drop_prob = 0.5
    keep_prob = 1.0 - drop_prob
    B = 4

    # Shared per-batch mask reference (same key as the kernel wrapper).
    rand = jax.random.uniform(k_drop, (B,), dtype=jnp.float32)
    mask = jnp.floor(keep_prob + rand)

    # ---- case 1: lane-dense C, divisible N (main Pallas path) ----
    N, C = 256, 128
    x = jax.random.normal(k_x, (N, C), dtype=jnp.float32)
    batch_ids = jnp.repeat(jnp.arange(B, dtype=jnp.int32), N // B)
    out = jax.block_until_ready(
        drop_path_pc(x, batch_ids, B, drop_prob, k_drop, training=True))
    ref = (x / keep_prob) * mask[batch_ids][:, None]
    assert jnp.allclose(out, ref, atol=1e-5, rtol=1e-5), "mismatch (main)"

    # ---- case 2: non-divisible N, C not a multiple of 128 (full-C block) ----
    N2, C2 = 200, 192
    x2 = jax.random.normal(jax.random.PRNGKey(3), (N2, C2), dtype=jnp.float32)
    ids2 = jnp.arange(N2, dtype=jnp.int32) % B
    out2 = jax.block_until_ready(
        drop_path_pc(x2, ids2, B, drop_prob, k_drop, training=True, tile_n=64))
    ref2 = (x2 / keep_prob) * mask[ids2][:, None]
    assert jnp.allclose(out2, ref2, atol=1e-5, rtol=1e-5), "mismatch (tail)"

    # ---- case 3: C < 128 takes the fused-XLA fallback ----
    N3, C3 = 64, 32
    x3 = jax.random.normal(jax.random.PRNGKey(5), (N3, C3), dtype=jnp.float32)
    ids3 = jnp.arange(N3, dtype=jnp.int32) % B
    out3 = jax.block_until_ready(
        drop_path_pc(x3, ids3, B, drop_prob, k_drop, training=True))
    ref3 = (x3 / keep_prob) * mask[ids3][:, None]
    assert jnp.allclose(out3, ref3, atol=1e-5, rtol=1e-5), "mismatch (small C)"

    # ---- case 4: eval / drop_prob == 0 is identity ----
    out_eval = drop_path_pc(x, batch_ids, B, drop_prob, k_drop, training=False)
    assert jnp.array_equal(out_eval, x)
    out_p0 = drop_path_pc(x, batch_ids, B, 0.0, k_drop, training=True)
    assert jnp.array_equal(out_p0, x)

    print("KERNEL_OK")
</pallas_src>

<mosaic_0001>
module attributes {stable_mosaic.version = 11 : i64} {
  func.func @_drop_path_kernel(%arg0: i32, %arg1: memref<64x1xf32, #tpu.memory_space<vmem>>, %arg2: memref<64x128xf32, #tpu.memory_space<vmem>>, %arg3: memref<64x128xf32, #tpu.memory_space<vmem>>) attributes {dimension_semantics = [#tpu.dimension_semantics<parallel>], iteration_bounds = array<i64: 4>, scalar_prefetch = 0 : i64, scratch_operands = 0 : i64, tpu.core_type = #tpu.core_type<tc>, window_params = [{transform_indices = @transform_0, window_bounds = array<i64: 64, 1>}, {transform_indices = @transform_1, window_bounds = array<i64: 64, 128>}, {transform_indices = @transform_2, window_bounds = array<i64: 64, 128>}]} {
    %c0 = arith.constant 0 : index
    %c0_0 = arith.constant 0 : index
    %0 = vector.load %arg2[%c0, %c0_0] : memref<64x128xf32, #tpu.memory_space<vmem>>, vector<64x128xf32>
    %c0_1 = arith.constant 0 : index
    %c0_2 = arith.constant 0 : index
    %1 = vector.load %arg1[%c0_1, %c0_2] : memref<64x1xf32, #tpu.memory_space<vmem>>, vector<64x1xf32>
    %2 = vector.broadcast %1 : vector<64x1xf32> to vector<64x128xf32>
    %3 = arith.mulf %0, %2 : vector<64x128xf32>
    %c0_3 = arith.constant 0 : index
    %c0_4 = arith.constant 0 : index
    %4 = vector.load %arg3[%c0_3, %c0_4] : memref<64x128xf32, #tpu.memory_space<vmem>>, vector<64x128xf32>
    tpu.vector_store %arg3[%c0_3, %c0_4], %3 {strides = array<i32>} : memref<64x128xf32, #tpu.memory_space<vmem>>, vector<64x128xf32>,
    return
  }
  func.func @transform_0(%arg0: i32) -> (i32, i32) {
    %c0_i32 = arith.constant 0 : i32
    %c0_i32_0 = arith.constant 0 : i32
    return %arg0, %c0_i32 : i32, i32
  }
  func.func @transform_1(%arg0: i32) -> (i32, i32) {
    %c0_i32 = arith.constant 0 : i32
    %c0_i32_0 = arith.constant 0 : i32
    return %arg0, %c0_i32 : i32, i32
  }
  func.func @transform_2(%arg0: i32) -> (i32, i32) {
    %c0_i32 = arith.constant 0 : i32
    %c0_i32_0 = arith.constant 0 : i32
    return %arg0, %c0_i32 : i32, i32
  }
}

</mosaic_0001>

<bundles_post_ra>
// kernel: tpu_custom_call.1
= control target key start
LH: loop header
LB: loop body
LE: loop exit
PB: predicated region body
PF: predicated region fallthrough
CT: control target
= control target key end

     0   :  { %7 = vsyncpa [#allocation3], 0  ;;  %s578_s0 = inlined_call_operand.vmem [shape: f32[256,1], index: 0, kind: input, shape index: {}]   ;;  %s579_s1 = inlined_call_operand.vmem [shape: f32[256,128], index: 1, kind: input, shape index: {}]   ;;  %s580_s2 = inlined_call_operand.hbm [shape: f32[256,128], index: 2, kind: output, shape index: {}]  }
   0x1   :  { %9 = vsyncpa [#allocation3 + $0x1], 0  ;;  %s469_s9 = smov 0   ;;  %s471_s10 = smov 0  }
   0x2   :  { %s473_s11 = smov 0   ;;  %s475_s12 = smov 0  }
   0x3 LB: > { %s490_s13 = sadd.s32 4294967295, %s448_s12   ;;  %s327_s14 = sadd.s32 4294967294, %s448_s12   ;;  %s448_s12 = sphi %s475_s12, %s586_s12   ;;  %s444_s11 = sphi %s473_s11, %s585_s11   ;;  %s440_s10 = sphi %s471_s10, %s584_s10   ;;  %s436_s9 = sphi %s469_s9, %s583_s9  }
   0x4   : > { %s494_s15 = sadd.s32 1, %s448_s12   ;;  %s74_s16 = sadd.s32 1, %s444_s11 }
   0x5   : > { %s71_s17 = ssub.s32 %s448_s12, %s494_s15  ;;  %p84_p0 = scmp.ne.s32.totalorder %s444_s11, %s440_s10 }
   0x6   : > { %p72_p1 = scmp.eq.s32.totalorder %s71_s17, 0  ;;  %p85_p2 = scmp.eq.s32.totalorder %s490_s13, 3 }
   0x7   : > { %p90_p3 = scmp.ne.s32.totalorder %s440_s10, %s436_s9  ;;  %p91_p4 = scmp.eq.s32.totalorder %s327_s14, 3 }
   0x8   : > { %s505_s18 = scalar_select %p72_p1, %s444_s11, %s74_s16  }
   0x9   : > { %p507_p5 = por %p85_p2, %p84_p0  ;;  %p511_p6 = por %p91_p4, %p90_p3 }
   0xa   : > { %p330_p7 = scmp.ge.s32.totalorder %s448_s12, 1  ;;  %p127_p8 = scmp.lt.s32.totalorder %s448_s12, 5 }
   0xc   : > { %p128_p9 = pnand %p330_p7, %p127_p8 }
   0xd   : > { %s332_s21 = sshll.u32 (!%p128_p9), %s490_s13, 3  ;;  %v450_v0 = vmov (!%p128_p9), 0   ;;  %s151_s26 = sand.u32 (!%p128_p9), 1, %s440_s10  }
   0xe   : > { %131 = sbr.rel (%p128_p9) target bundleno = 182 (0xb6), region = 28  ;;  %385 = vset.pattern.permute.xlu1 (!%p128_p9), %v450_v0  ;;  %384 = vset.pattern.permute.xlu0 (!%p128_p9), %v450_v0  ;;  %p155_p10 = scmp.lt.s32.totalorder (!%p128_p9), %s332_s21, 31 }
   0xf   : > { %s331_s30 = sshll.u32 (!%p128_p9), %s151_s26, 6  ;;  %s341_s4 = sshll.u32 (!%p128_p9), %s490_s13, 10 }
  0x10   : > { %s153_s3 = scalar_lea.vmem (!%p128_p9), [#allocation2], %s331_s30  ;;  %s531_s8 = scalar_lea.hbm (!%p128_p9), %s580_s2, %s341_s4 }
  0x11   : > { %s253_s5 = sshll.u32 (!%p128_p9), %s153_s3, 4  ;;  %s537_s13 = scalar_lea.sflag (!%p128_p9), [#allocation3], %s151_s26  ;;  %s533_s5 = int_to_ptr.vmem [resolvable:$true] %s253_s5 }
  0x12   : > { %s386_s14 = scalar_lea.vmem (!%p128_p9), %s533_s5, 1024  ;;  %s451_s16 = smov (!%p128_p9), [#allocation2]  }
  0x13   : > { %p387_p11 = scmp.ne.s32.totalorder (!%p128_p9), %s533_s5, %s386_s14  ;;  %s390_s17 = sshll.u32 (!%p128_p9), %s451_s16, 4  ;;  %s391_s17 = int_to_ptr.vmem [resolvable:$false] %s390_s17 }
  0x14   : > { %p393_p0 = scmp.lt.s32.totalorder (!%p128_p9), %s533_s5, %s391_s17 }
  0x15   : > { %s588_s21 = smov (!%p155_p10, %s332_s21), 31  ;;  %p388_p12 = pnand %p387_p11, %p507_p5 }
  0x16   : > { %s333_s22 = sshll.u32 %s588_s21, 3  ;;  %s392_s21 = scalar_lea.vmem %s391_s17, 2048 }
  0x17   : > { %s158_s25 = scalar_lea.vmem %s578_s0, %s333_s22  ;;  %s164_s29 = scalar_lea.vmem %s579_s1, %s333_s22 }
  0x18   : > { %v177_v1 = vld [vmem:[%s158_s25 + $0x10] sm:$0xff]  ;;  %v175_v2 = vld [vmem:[%s158_s25] sm:$0xff]  ;;  %v178_v3 = vld [vmem:[%s158_s25 + $0x18] sm:$0xff]  ;;  %p389_p13 = pneg %p388_p12  ;;  %p394_p1 = scmp.lt.s32.totalorder %s392_s21, %s386_s14 }
  0x19   : > { %195 = vperm.xlu1 %385, %v177_v1   ;;  %185 = vperm.xlu0 %384, %v175_v2   ;;  %v176_v4 = vld [vmem:[%s158_s25 + $0x8] sm:$0xff]  ;;  %v179_v6 = vld [vmem:[%s158_s25 + $0x20] sm:$0xff]  ;;  %v182_v7 = vld [vmem:[%s158_s25 + $0x38] sm:$0xff] }
  0x1a   : > { %v180_v5 = vld [vmem:[%s158_s25 + $0x28] sm:$0xff]  ;;  %v181_v8 = vld [vmem:[%s158_s25 + $0x30] sm:$0xff]  ;;  %v167_v10 = vld [vmem:[%s164_s29] sm:$0xff]  ;;  %p395_p2 = por %p394_p1, %p393_p0 }
  0x1b   : > { %v169_v9 = vld [vmem:[%s164_s29 + $0x10] sm:$0xff]  ;;  %v170_v15 = vld [vmem:[%s164_s29 + $0x18] sm:$0xff]  ;;  %v168_v16 = vld [vmem:[%s164_s29 + $0x8] sm:$0xff] }
  0x1c   : > { %v172_v21 = vld [vmem:[%s164_s29 + $0x28] sm:$0xff]  ;;  %v171_v22 = vld [vmem:[%s164_s29 + $0x20] sm:$0xff]  ;;  %v174_v27 = vld [vmem:[%s164_s29 + $0x38] sm:$0xff]  ;;  %p396_p3 = pnand %p395_p2, %p389_p13 }
  0x1d   : > { %200 = vperm.xlu1 %385, %v178_v3   ;;  %190 = vperm.xlu0 %384, %v176_v4   ;;  %v173_v28 = vld [vmem:[%s164_s29 + $0x30] sm:$0xff] }
  0x21   : > { %210 = vperm.xlu1 %385, %v180_v5   ;;  %205 = vperm.xlu0 %384, %v179_v6  }
  0x25   : > { %220 = vperm.xlu1 %385, %v182_v7   ;;  %215 = vperm.xlu0 %384, %v181_v8  }
  0x98   : > { %v196_v11 = vpop.permute.xlu1 %195  ;;  %v186_v12 = vpop.permute.xlu0 %185 }
  0x99   : > { %v225_v13 = vmul.f32 %v196_v11, %v169_v9  ;;  %v223_v14 = vmul.f32 %v186_v12, %v167_v10 }
  0x9b   : > { %233 = vst [vmem:[%s153_s3 + $0x10] sm:$0xff] %v225_v13  ;;  %231 = vst [vmem:[%s153_s3] sm:$0xff] %v223_v14 }
  0x9c   : > { %v201_v17 = vpop.permute.xlu1 %200  ;;  %v191_v18 = vpop.permute.xlu0 %190 }
  0x9d   : > { %v226_v19 = vmul.f32 %v201_v17, %v170_v15  ;;  %v224_v20 = vmul.f32 %v191_v18, %v168_v16 }
  0x9f   : > { %234 = vst [vmem:[%s153_s3 + $0x18] sm:$0xff] %v226_v19  ;;  %232 = vst [vmem:[%s153_s3 + $0x8] sm:$0xff] %v224_v20 }
  0xa0   : > { %v211_v23 = vpop.permute.xlu1 %210  ;;  %v206_v24 = vpop.permute.xlu0 %205 }
  0xa1   : > { %v228_v25 = vmul.f32 %v211_v23, %v172_v21  ;;  %v227_v26 = vmul.f32 %v206_v24, %v171_v22 }
  0xa3   : > { %236 = vst [vmem:[%s153_s3 + $0x28] sm:$0xff] %v228_v25  ;;  %235 = vst [vmem:[%s153_s3 + $0x20] sm:$0xff] %v227_v26 }
  0xa4   : > { %v221_v29 = vpop.permute.xlu1 %220  ;;  %v216_v30 = vpop.permute.xlu0 %215 }
  0xa5   : > { %v230_v31 = vmul.f32 %v221_v29, %v174_v27  ;;  %v229_v32 = vmul.f32 %v216_v30, %v173_v28 }
  0xa7   : > { %238 = vst [vmem:[%s153_s3 + $0x38] sm:$0xff] %v230_v31  ;;  %237 = vst [vmem:[%s153_s3 + $0x30] sm:$0xff] %v229_v32 }
  0xa8   : > { %399 = shalt.err (!%p396_p3)
}
  0xa9   : > { %s400_s22 = scalar_lea.hbm %s531_s8, 1024  ;;  %s404_s25 = scalar_lea.hbm %s580_s2, 4096 }
  0xaa   : > { %p401_p4 = scmp.ne.s32.totalorder %s531_s8, %s400_s22  ;;  %p405_p9 = scmp.lt.u32.totalorder %s531_s8, %s580_s2 }
  0xab   : > { %p406_p10 = scmp.lt.u32.totalorder %s404_s25, %s400_s22  ;;  %p408_p12 = scmp.lt.u32.totalorder %s400_s22, %s531_s8 }
  0xac   : > { %p402_p7 = pnand %p401_p4, %p507_p5 }
  0xad   : > { %p407_p11 = por %p406_p10, %p405_p9 }
  0xae   : > { %p403_p8 = pneg %p402_p7 }
  0xaf   : > { %p409_p13 = por %p408_p12, %p407_p11 }
  0xb1   : > { %p410_p0 = pnand %p409_p13, %p403_p8 }
  0xb3   : > { %413 = shalt.err (!%p410_p0)
}
  0xb4   : > { %s452_s28 = smov 128   ;;  %s453_s29 = smov 8  }
  0xb5   : > { %342 = dma.vmem_to_hbm [thread:$0]  (%p507_p5), %s533_s5, 1024, %s531_s8, %s537_s13, %s452_s28, %s452_s28, %s453_s29  }
  0xb6 PF: > { %p348_p1 = scmp.ge.s32.totalorder %s448_s12, 2  ;;  %s268_s30 = sand.u32 1, %s436_s9  }
  0xb7   : > { %s269_s3 = scalar_lea.sflag [#allocation3], %s268_s30 }
  0xb8   : > { %p345_p2 = pnand %p348_p1, %p511_p6 }
  0xba   : > { %431 = dma.done.wait (!%p345_p2), %s269_s3, 1024  }
  0xbb   : > { %433 = vsyncadd (!%p345_p2), %s269_s3, 4294966272  ;;  %p12_p3 = scmp.ge.s32.totalorder %s494_s15, 6   ;;  %s583_s9 = smov %s440_s10 }
  0xbc   : > { %s584_s10 = smov %s444_s11  ;;  %s585_s11 = smov %s505_s18 }
  0xbd   : > { %s586_s12 = smov %s494_s15  ;;  %14 = sbr.rel (!%p12_p3) target bundleno = 3 (0x3), region = 66 }
  0xc4   :  { %274 = vsyncpa [#allocation3], 1 }
  0xc5   :  { %276 = vsyncpa [#allocation3 + $0x1], 1 }

</bundles_post_ra>
